<compile_context>
chip_gen: v7x
topology: tpu7x:2x2x1
jax: 0.10.0
libtpu: 0.0.40
codegen_flags: <defaults>
</compile_context>

<pallas_src>
import functools

import jax
import jax.numpy as jnp
import numpy as np
from jax.experimental import pallas as pl
from jax.experimental.pallas import tpu as pltpu

RRELU_SLOPE = (1.0 / 8.0 + 1.0 / 3.0) / 2.0  # torch.rrelu eval-mode slope


def _cnn_slot_kernel(x_ref, *refs, num_convs, kernel_size, pad, seq_len,
                     matmul_dtype):
    """Fused conv stack + fc on a (rows = bb*S, C) activation slab.

    refs = (W0, b0, W1, b1, ..., Wfc, bfc, out_ref)
      Wl : (K, Cin_l, Cout_l)   bl : (1, Cout_l)
      Wfc: (C_last, out_pad)    bfc: (1, out_pad)   (out lane-padded to 128)
    """
    out_ref = refs[-1]
    conv_refs = refs[: 2 * num_convs]
    wf_ref, bf_ref = refs[2 * num_convs], refs[2 * num_convs + 1]

    h = x_ref[...].astype(jnp.float32)          # (rows, E)
    rows = h.shape[0]

    # "Same"-padding masks.  Batch is folded into the row axis, so a row shift
    # of +/-d must contribute zeros whenever it would cross a sequence
    # boundary.  One (rows, 1) f32 mask per non-center tap, shared by every
    # conv layer (depends only on s = r mod S).  Because every slab edge is a
    # sequence boundary, the same mask also zeroes the rows that a *circular*
    # roll wraps around — which is what makes pltpu.roll safe here.
    s_idx = jax.lax.broadcasted_iota(jnp.int32, (rows, 1), 0) % seq_len
    tap_mask = []
    for k in range(kernel_size):
        d = k - pad
        if d == 0:
            tap_mask.append(None)
        else:
            ok = jnp.logical_and(s_idx + d >= 0, s_idx + d < seq_len)
            tap_mask.append(ok.astype(jnp.float32))

    for l in range(num_convs):
        w_ref = conv_refs[2 * l]                # (K, Cin, Cout)
        b_ref = conv_refs[2 * l + 1]            # (1, Cout)

        hm = h.astype(matmul_dtype)
        # Center tap first: no shift, no mask.
        y = jnp.dot(hm, w_ref[pad], preferred_element_type=jnp.float32)
        # Remaining taps: circular sublane roll (XLU) + boundary mask (VPU),
        # then an accumulating matmul per tap.
        for k in range(kernel_size):
            d = k - pad
            if d == 0:
                continue
            shifted = pltpu.roll(h, shift=(-d) % rows, axis=0) * tap_mask[k]
            y = y + jnp.dot(shifted.astype(matmul_dtype), w_ref[k],
                            preferred_element_type=jnp.float32)
        y = y + b_ref[...]                      # bias add, implicit broadcast
        # torch.rrelu in eval mode: leaky relu with fixed average slope.
        h = jnp.where(y >= 0, y, RRELU_SLOPE * y)

    # dropout is identity at inference time.
    logits = jnp.dot(h.astype(matmul_dtype), wf_ref[...],
                     preferred_element_type=jnp.float32)
    logits = logits + bf_ref[...]
    out_ref[...] = logits.astype(out_ref.dtype)  # lane-dense (…,128) store


def _pick_batch_block(B, S, *, target_rows=2048, split_threshold_rows=1024):
    """Largest whole-batch-element row block: bb | B, bb*S sublane-aligned and
    <= target_rows.  When the total problem is large enough to be compute
    visible we also keep B // bb >= 2 so a "parallel" grid axis can be sharded
    across v7x's two TensorCores (at small B*S this gate is a no-op)."""
    total_rows = B * S
    want_split = total_rows >= split_threshold_rows and B >= 2
    best = None
    for bb in range(1, B + 1):
        if B % bb:
            continue
        rows = bb * S
        if rows > target_rows:
            break
        if rows % 8:
            continue
        if want_split and B // bb < 2:
            continue
        best = bb
    if best is None:
        best = B  # full-array block shape is always legal
    return best


def prepare_cnn_slot_params(conv_params, fc_w, fc_b, *,
                            matmul_dtype=jnp.float32, lane_multiple=128):
    """One-time (init-time) parameter preparation — hoisted out of the
    per-call hot path.  Conv weights stay in their natural (K, Cin, Cout)
    layout (per-tap matmuls need no repacking); fc weight/bias are zero-padded
    to 128 output lanes so the final store is an unmasked full-lane vst.

    Set matmul_dtype=jnp.bfloat16 for large B*S on v6e/v7x (f32 accumulation
    is kept via preferred_element_type); keep f32 for tight tolerances.
    """
    out_dim = fc_w.shape[1]
    convs = [(jnp.asarray(W, matmul_dtype), jnp.asarray(b, jnp.float32))
             for (W, b) in conv_params]
    out_pad = ((out_dim + lane_multiple - 1) // lane_multiple) * lane_multiple
    # TODO(synk): on v5e at very large B*S the 128-lane padding (out_dim=8 ->
    # 16x write amplification) plus the post-kernel slice can become the HBM
    # roofline; in that regime let downstream consume the padded slab or use a
    # full-extent masked store instead.
    fc_w_p = jnp.zeros((fc_w.shape[0], out_pad), matmul_dtype)
    fc_w_p = fc_w_p.at[:, :out_dim].set(fc_w.astype(matmul_dtype))
    fc_b_p = jnp.zeros((1, out_pad), jnp.float32)
    fc_b_p = fc_b_p.at[:, :out_dim].set(fc_b.astype(jnp.float32))
    return dict(convs=convs, fc_w=fc_w_p, fc_b=fc_b_p,
                out_dim=out_dim, out_pad=out_pad, matmul_dtype=matmul_dtype)


def cnn_slot_forward(x_emb, params, *, kernel_size, target_rows=2048):
    """x_emb: (B, S, E) float32 (already embedded). Returns (B, S, out_dim).

    `params` comes from prepare_cnn_slot_params (called once at init).
    """
    B, S, E = x_emb.shape
    convs = params["convs"]
    num_convs = len(convs)
    pad = (kernel_size - 1) // 2
    out_dim, out_pad = params["out_dim"], params["out_pad"]

    # Fold batch into the matmul M dimension: one (B*S, E) slab.
    x_flat = x_emb.reshape(B * S, E)

    bb = _pick_batch_block(B, S, target_rows=target_rows)
    rows = bb * S
    grid = (B // bb,)   # row-tile axis, "parallel" (v7x shards across 2 TCs)

    in_specs = [pl.BlockSpec((rows, E), lambda i: (i, 0))]
    args = [x_flat]
    for (W, bias) in convs:
        in_specs.append(pl.BlockSpec(W.shape, lambda i: (0, 0, 0)))
        in_specs.append(pl.BlockSpec(bias.shape, lambda i: (0, 0)))
        args += [W, bias]
    in_specs.append(pl.BlockSpec(params["fc_w"].shape, lambda i: (0, 0)))
    in_specs.append(pl.BlockSpec(params["fc_b"].shape, lambda i: (0, 0)))
    args += [params["fc_w"], params["fc_b"]]

    kernel = functools.partial(_cnn_slot_kernel, num_convs=num_convs,
                               kernel_size=kernel_size, pad=pad, seq_len=S,
                               matmul_dtype=params["matmul_dtype"])
    out_flat = pl.pallas_call(
        kernel,
        out_shape=jax.ShapeDtypeStruct((B * S, out_pad), jnp.float32),
        grid=grid,
        in_specs=in_specs,
        out_specs=pl.BlockSpec((rows, out_pad), lambda i: (i, 0)),
        compiler_params=pltpu.CompilerParams(dimension_semantics=("parallel",)),
    )(*args)
    return out_flat[:, :out_dim].reshape(B, S, out_dim)


def reference_forward(query, emb_table, conv_params, fc_w, fc_b, *, kernel_size):
    """Pure-JAX reference mirroring the PyTorch forward (eval mode)."""
    pad = (kernel_size - 1) // 2
    h = emb_table[query]  # (B, S, E)
    B, S, _ = h.shape
    for (W, b) in conv_params:
        K, Cin, Cout = W.shape
        hp = jnp.pad(h, ((0, 0), (pad, pad), (0, 0)))
        y = jnp.zeros((B, S, Cout), jnp.float32) + b
        for k in range(K):
            y = y + jnp.einsum("bsc,co->bso", hp[:, k:k + S, :], W[k])
        h = jnp.where(y >= 0, y, RRELU_SLOPE * y)
    return jnp.einsum("bsc,co->bso", h, fc_w) + fc_b


if __name__ == "__main__":
    # Module hyperparams (small, consistent with CNNSlot.__init__)
    input_dim = 50          # vocab size
    embedding_dim = 32
    output_dim = 8
    filter_sizes = (16, 32)
    kernel_size = 3         # padding = 1 -> "same" length
    B, S = 2, 8

    key = jax.random.PRNGKey(0)
    k_emb, k_q, key = jax.random.split(key, 3)

    # Deterministic synthetic parameters
    emb_table = jax.random.normal(k_emb, (input_dim, embedding_dim), jnp.float32)

    conv_params = []
    c_in = embedding_dim
    for c_out in filter_sizes:
        key, kw, kb = jax.random.split(key, 3)
        fan_in = c_in * kernel_size
        bound = 1.0 / np.sqrt(fan_in)
        W = jax.random.uniform(kw, (kernel_size, c_in, c_out), jnp.float32,
                               -bound, bound)
        bias = jax.random.uniform(kb, (1, c_out), jnp.float32, -bound, bound)
        conv_params.append((W, bias))
        c_in = c_out

    key, kw, kb = jax.random.split(key, 3)
    bound = 1.0 / np.sqrt(filter_sizes[-1])
    fc_w = jax.random.uniform(kw, (filter_sizes[-1], output_dim), jnp.float32,
                              -bound, bound)
    fc_b = jax.random.uniform(kb, (1, output_dim), jnp.float32, -bound, bound)

    # Deterministic token ids
    query = jax.random.randint(k_q, (B, S), 0, input_dim, jnp.int32)

    # One-time parameter preparation (hoisted out of the forward hot path).
    # matmul_dtype=jnp.bfloat16 is the v6e/v7x lever at large B*S; f32 here to
    # keep the tight correctness tolerance at these tiny shapes.
    prepared = prepare_cnn_slot_params(conv_params, fc_w, fc_b,
                                       matmul_dtype=jnp.float32)

    # Glue: embedding gather in plain JAX, hot path in the Pallas kernel.
    # TODO(synk): fusing the embedding gather via PrefetchScalarGridSpec +
    # pl.Element row index_map only pays off once B*S is large.
    x_emb = emb_table[query]                              # (B, S, E)
    out = cnn_slot_forward(x_emb, prepared, kernel_size=kernel_size)
    out = jax.block_until_ready(out)

    ref = reference_forward(query, emb_table, conv_params, fc_w, fc_b,
                            kernel_size=kernel_size)
    np.testing.assert_allclose(np.asarray(out), np.asarray(ref),
                               rtol=1e-5, atol=1e-5)
    print("KERNEL_OK")
</pallas_src>

<mosaic_0001>
module attributes {stable_mosaic.version = 11 : i64} {
  func.func @_cnn_slot_kernel(%arg0: i32, %arg1: memref<16x32xf32, #tpu.memory_space<vmem>>, %arg2: memref<3x32x16xf32, #tpu.memory_space<vmem>>, %arg3: memref<1x16xf32, #tpu.memory_space<vmem>>, %arg4: memref<3x16x32xf32, #tpu.memory_space<vmem>>, %arg5: memref<1x32xf32, #tpu.memory_space<vmem>>, %arg6: memref<32x128xf32, #tpu.memory_space<vmem>>, %arg7: memref<1x128xf32, #tpu.memory_space<vmem>>, %arg8: memref<16x128xf32, #tpu.memory_space<vmem>>) attributes {dimension_semantics = [#tpu.dimension_semantics<parallel>], iteration_bounds = array<i64: 1>, scalar_prefetch = 0 : i64, scratch_operands = 0 : i64, tpu.core_type = #tpu.core_type<tc>, window_params = [{transform_indices = @transform_0, window_bounds = array<i64: 16, 32>}, {pipeline_mode = #tpu.pipeline_mode<synchronous>, transform_indices = @transform_1, window_bounds = array<i64: 3, 32, 16>}, {pipeline_mode = #tpu.pipeline_mode<synchronous>, transform_indices = @transform_2, window_bounds = array<i64: 1, 16>}, {pipeline_mode = #tpu.pipeline_mode<synchronous>, transform_indices = @transform_3, window_bounds = array<i64: 3, 16, 32>}, {pipeline_mode = #tpu.pipeline_mode<synchronous>, transform_indices = @transform_4, window_bounds = array<i64: 1, 32>}, {pipeline_mode = #tpu.pipeline_mode<synchronous>, transform_indices = @transform_5, window_bounds = array<i64: 32, 128>}, {pipeline_mode = #tpu.pipeline_mode<synchronous>, transform_indices = @transform_6, window_bounds = array<i64: 1, 128>}, {transform_indices = @transform_7, window_bounds = array<i64: 16, 128>}]} {
    %c0 = arith.constant 0 : index
    %c0_0 = arith.constant 0 : index
    %0 = vector.load %arg1[%c0, %c0_0] : memref<16x32xf32, #tpu.memory_space<vmem>>, vector<16x32xf32>
    %1 = tpu.iota {dimensions = array<i32: 0>} : vector<16x1xi32>
    %c8_i32 = arith.constant 8 : i32
    %c0_i32 = arith.constant 0 : i32
    %2 = arith.cmpi eq, %c8_i32, %c0_i32 : i32
    %c1_i32 = arith.constant 1 : i32
    %3 = arith.select %2, %c1_i32, %c8_i32 : i32
    %4 = vector.broadcast %3 : i32 to vector<16x1xi32>
    %5 = arith.remsi %1, %4 : vector<16x1xi32>
    %c0_i32_1 = arith.constant 0 : i32
    %6 = vector.broadcast %c0_i32_1 : i32 to vector<16x1xi32>
    %7 = arith.cmpi ne, %5, %6 : vector<16x1xi32>
    %c0_i32_2 = arith.constant 0 : i32
    %8 = vector.broadcast %c0_i32_2 : i32 to vector<16x1xi32>
    %9 = arith.cmpi slt, %5, %8 : vector<16x1xi32>
    %c0_i32_3 = arith.constant 0 : i32
    %10 = arith.cmpi slt, %3, %c0_i32_3 : i32
    %11 = vector.broadcast %10 : i1 to vector<16x1xi1>
    %12 = vector.broadcast %11 : vector<16x1xi1> to vector<16x1xi1>
    %13 = arith.xori %9, %12 : vector<16x1xi1>
    %14 = arith.andi %13, %7 : vector<16x1xi1>
    %15 = vector.broadcast %3 : i32 to vector<16x1xi32>
    %16 = arith.addi %5, %15 : vector<16x1xi32>
    %17 = arith.select %14, %16, %5 : vector<16x1xi1>, vector<16x1xi32>
    %c-1_i32 = arith.constant -1 : i32
    %18 = vector.broadcast %c-1_i32 : i32 to vector<16x1xi32>
    %19 = arith.addi %17, %18 : vector<16x1xi32>
    %c0_i32_4 = arith.constant 0 : i32
    %20 = vector.broadcast %c0_i32_4 : i32 to vector<16x1xi32>
    %21 = arith.cmpi sge, %19, %20 : vector<16x1xi32>
    %c-1_i32_5 = arith.constant -1 : i32
    %22 = vector.broadcast %c-1_i32_5 : i32 to vector<16x1xi32>
    %23 = arith.addi %17, %22 : vector<16x1xi32>
    %c8_i32_6 = arith.constant 8 : i32
    %24 = vector.broadcast %c8_i32_6 : i32 to vector<16x1xi32>
    %25 = arith.cmpi slt, %23, %24 : vector<16x1xi32>
    %26 = arith.andi %21, %25 : vector<16x1xi1>
    %27 = arith.extui %26 : vector<16x1xi1> to vector<16x1xi32>
    %28 = arith.sitofp %27 : vector<16x1xi32> to vector<16x1xf32>
    %c1_i32_7 = arith.constant 1 : i32
    %29 = vector.broadcast %c1_i32_7 : i32 to vector<16x1xi32>
    %30 = arith.addi %17, %29 : vector<16x1xi32>
    %c0_i32_8 = arith.constant 0 : i32
    %31 = vector.broadcast %c0_i32_8 : i32 to vector<16x1xi32>
    %32 = arith.cmpi sge, %30, %31 : vector<16x1xi32>
    %c1_i32_9 = arith.constant 1 : i32
    %33 = vector.broadcast %c1_i32_9 : i32 to vector<16x1xi32>
    %34 = arith.addi %17, %33 : vector<16x1xi32>
    %c8_i32_10 = arith.constant 8 : i32
    %35 = vector.broadcast %c8_i32_10 : i32 to vector<16x1xi32>
    %36 = arith.cmpi slt, %34, %35 : vector<16x1xi32>
    %37 = arith.andi %32, %36 : vector<16x1xi1>
    %38 = arith.extui %37 : vector<16x1xi1> to vector<16x1xi32>
    %39 = arith.sitofp %38 : vector<16x1xi32> to vector<16x1xf32>
    %c1 = arith.constant 1 : index
    %c0_11 = arith.constant 0 : index
    %c0_12 = arith.constant 0 : index
    %40 = vector.load %arg2[%c1, %c0_11, %c0_12] : memref<3x32x16xf32, #tpu.memory_space<vmem>>, vector<1x32x16xf32>
    %41 = vector.shape_cast %40 : vector<1x32x16xf32> to vector<32x16xf32>
    %cst = arith.constant dense<0.000000e+00> : vector<16x16xf32>
    %42 = tpu.matmul %0, %41, %cst {dimension_numbers = #tpu.dot_dimension_numbers<[1], [0], [0], [1], [0, 0, 1, 1], [], []>} : vector<16x32xf32>, vector<32x16xf32>, vector<16x16xf32> -> vector<16x16xf32>
    %c1_i32_13 = arith.constant 1 : i32
    %43 = tpu.dynamic_rotate %0 by %c1_i32_13 dim 0 : vector<16x32xf32>, i32 -> vector<16x32xf32>
    %44 = vector.broadcast %28 : vector<16x1xf32> to vector<16x32xf32>
    %45 = arith.mulf %43, %44 : vector<16x32xf32>
    %c0_14 = arith.constant 0 : index
    %c0_15 = arith.constant 0 : index
    %c0_16 = arith.constant 0 : index
    %46 = vector.load %arg2[%c0_14, %c0_15, %c0_16] : memref<3x32x16xf32, #tpu.memory_space<vmem>>, vector<1x32x16xf32>
    %47 = vector.shape_cast %46 : vector<1x32x16xf32> to vector<32x16xf32>
    %cst_17 = arith.constant dense<0.000000e+00> : vector<16x16xf32>
    %48 = tpu.matmul %45, %47, %cst_17 {dimension_numbers = #tpu.dot_dimension_numbers<[1], [0], [0], [1], [0, 0, 1, 1], [], []>} : vector<16x32xf32>, vector<32x16xf32>, vector<16x16xf32> -> vector<16x16xf32>
    %49 = arith.addf %42, %48 : vector<16x16xf32>
    %c15_i32 = arith.constant 15 : i32
    %50 = tpu.dynamic_rotate %0 by %c15_i32 dim 0 : vector<16x32xf32>, i32 -> vector<16x32xf32>
    %51 = vector.broadcast %39 : vector<16x1xf32> to vector<16x32xf32>
    %52 = arith.mulf %50, %51 : vector<16x32xf32>
    %c2 = arith.constant 2 : index
    %c0_18 = arith.constant 0 : index
    %c0_19 = arith.constant 0 : index
    %53 = vector.load %arg2[%c2, %c0_18, %c0_19] : memref<3x32x16xf32, #tpu.memory_space<vmem>>, vector<1x32x16xf32>
    %54 = vector.shape_cast %53 : vector<1x32x16xf32> to vector<32x16xf32>
    %cst_20 = arith.constant dense<0.000000e+00> : vector<16x16xf32>
    %55 = tpu.matmul %52, %54, %cst_20 {dimension_numbers = #tpu.dot_dimension_numbers<[1], [0], [0], [1], [0, 0, 1, 1], [], []>} : vector<16x32xf32>, vector<32x16xf32>, vector<16x16xf32> -> vector<16x16xf32>
    %56 = arith.addf %49, %55 : vector<16x16xf32>
    %c0_21 = arith.constant 0 : index
    %c0_22 = arith.constant 0 : index
    %57 = vector.load %arg3[%c0_21, %c0_22] : memref<1x16xf32, #tpu.memory_space<vmem>>, vector<1x16xf32>
    %58 = vector.broadcast %57 : vector<1x16xf32> to vector<16x16xf32>
    %59 = arith.addf %56, %58 : vector<16x16xf32>
    %cst_23 = arith.constant 0.000000e+00 : f32
    %60 = vector.broadcast %cst_23 : f32 to vector<16x16xf32>
    %61 = arith.cmpf oge, %59, %60 : vector<16x16xf32>
    %cst_24 = arith.constant 0.229166672 : f32
    %62 = vector.broadcast %cst_24 : f32 to vector<16x16xf32>
    %63 = arith.mulf %62, %59 : vector<16x16xf32>
    %64 = arith.select %61, %59, %63 : vector<16x16xi1>, vector<16x16xf32>
    %c1_25 = arith.constant 1 : index
    %c0_26 = arith.constant 0 : index
    %c0_27 = arith.constant 0 : index
    %65 = vector.load %arg4[%c1_25, %c0_26, %c0_27] : memref<3x16x32xf32, #tpu.memory_space<vmem>>, vector<1x16x32xf32>
    %66 = vector.shape_cast %65 : vector<1x16x32xf32> to vector<16x32xf32>
    %cst_28 = arith.constant dense<0.000000e+00> : vector<16x32xf32>
    %67 = tpu.matmul %64, %66, %cst_28 {dimension_numbers = #tpu.dot_dimension_numbers<[1], [0], [0], [1], [0, 0, 1, 1], [], []>} : vector<16x16xf32>, vector<16x32xf32>, vector<16x32xf32> -> vector<16x32xf32>
    %c1_i32_29 = arith.constant 1 : i32
    %68 = tpu.dynamic_rotate %64 by %c1_i32_29 dim 0 : vector<16x16xf32>, i32 -> vector<16x16xf32>
    %69 = vector.broadcast %28 : vector<16x1xf32> to vector<16x16xf32>
    %70 = arith.mulf %68, %69 : vector<16x16xf32>
    %c0_30 = arith.constant 0 : index
    %c0_31 = arith.constant 0 : index
    %c0_32 = arith.constant 0 : index
    %71 = vector.load %arg4[%c0_30, %c0_31, %c0_32] : memref<3x16x32xf32, #tpu.memory_space<vmem>>, vector<1x16x32xf32>
    %72 = vector.shape_cast %71 : vector<1x16x32xf32> to vector<16x32xf32>
    %cst_33 = arith.constant dense<0.000000e+00> : vector<16x32xf32>
    %73 = tpu.matmul %70, %72, %cst_33 {dimension_numbers = #tpu.dot_dimension_numbers<[1], [0], [0], [1], [0, 0, 1, 1], [], []>} : vector<16x16xf32>, vector<16x32xf32>, vector<16x32xf32> -> vector<16x32xf32>
    %74 = arith.addf %67, %73 : vector<16x32xf32>
    %c15_i32_34 = arith.constant 15 : i32
    %75 = tpu.dynamic_rotate %64 by %c15_i32_34 dim 0 : vector<16x16xf32>, i32 -> vector<16x16xf32>
    %76 = vector.broadcast %39 : vector<16x1xf32> to vector<16x16xf32>
    %77 = arith.mulf %75, %76 : vector<16x16xf32>
    %c2_35 = arith.constant 2 : index
    %c0_36 = arith.constant 0 : index
    %c0_37 = arith.constant 0 : index
    %78 = vector.load %arg4[%c2_35, %c0_36, %c0_37] : memref<3x16x32xf32, #tpu.memory_space<vmem>>, vector<1x16x32xf32>
    %79 = vector.shape_cast %78 : vector<1x16x32xf32> to vector<16x32xf32>
    %cst_38 = arith.constant dense<0.000000e+00> : vector<16x32xf32>
    %80 = tpu.matmul %77, %79, %cst_38 {dimension_numbers = #tpu.dot_dimension_numbers<[1], [0], [0], [1], [0, 0, 1, 1], [], []>} : vector<16x16xf32>, vector<16x32xf32>, vector<16x32xf32> -> vector<16x32xf32>
    %81 = arith.addf %74, %80 : vector<16x32xf32>
    %c0_39 = arith.constant 0 : index
    %c0_40 = arith.constant 0 : index
    %82 = vector.load %arg5[%c0_39, %c0_40] : memref<1x32xf32, #tpu.memory_space<vmem>>, vector<1x32xf32>
    %83 = vector.broadcast %82 : vector<1x32xf32> to vector<16x32xf32>
    %84 = arith.addf %81, %83 : vector<16x32xf32>
    %cst_41 = arith.constant 0.000000e+00 : f32
    %85 = vector.broadcast %cst_41 : f32 to vector<16x32xf32>
    %86 = arith.cmpf oge, %84, %85 : vector<16x32xf32>
    %cst_42 = arith.constant 0.229166672 : f32
    %87 = vector.broadcast %cst_42 : f32 to vector<16x32xf32>
    %88 = arith.mulf %87, %84 : vector<16x32xf32>
    %89 = arith.select %86, %84, %88 : vector<16x32xi1>, vector<16x32xf32>
    %c0_43 = arith.constant 0 : index
    %c0_44 = arith.constant 0 : index
    %90 = vector.load %arg6[%c0_43, %c0_44] : memref<32x128xf32, #tpu.memory_space<vmem>>, vector<32x128xf32>
    %cst_45 = arith.constant dense<0.000000e+00> : vector<16x128xf32>
    %91 = tpu.matmul %89, %90, %cst_45 {dimension_numbers = #tpu.dot_dimension_numbers<[1], [0], [0], [1], [0, 0, 1, 1], [], []>} : vector<16x32xf32>, vector<32x128xf32>, vector<16x128xf32> -> vector<16x128xf32>
    %c0_46 = arith.constant 0 : index
    %c0_47 = arith.constant 0 : index
    %92 = vector.load %arg7[%c0_46, %c0_47] : memref<1x128xf32, #tpu.memory_space<vmem>>, vector<1x128xf32>
    %93 = vector.broadcast %92 : vector<1x128xf32> to vector<16x128xf32>
    %94 = arith.addf %91, %93 : vector<16x128xf32>
    %c0_48 = arith.constant 0 : index
    %c0_49 = arith.constant 0 : index
    %95 = vector.load %arg8[%c0_48, %c0_49] : memref<16x128xf32, #tpu.memory_space<vmem>>, vector<16x128xf32>
    tpu.vector_store %arg8[%c0_48, %c0_49], %94 {strides = array<i32>} : memref<16x128xf32, #tpu.memory_space<vmem>>, vector<16x128xf32>,
    return
  }
  func.func @transform_0(%arg0: i32) -> (i32, i32) {
    %c0_i32 = arith.constant 0 : i32
    %c0_i32_0 = arith.constant 0 : i32
    return %arg0, %c0_i32 : i32, i32
  }
  func.func @transform_1(%arg0: i32) -> (i32, i32, i32) {
    %c0_i32 = arith.constant 0 : i32
    %c0_i32_0 = arith.constant 0 : i32
    %c0_i32_1 = arith.constant 0 : i32
    %c0_i32_2 = arith.constant 0 : i32
    return %c0_i32, %c0_i32_0, %c0_i32_1 : i32, i32, i32
  }
  func.func @transform_2(%arg0: i32) -> (i32, i32) {
    %c0_i32 = arith.constant 0 : i32
    %c0_i32_0 = arith.constant 0 : i32
    %c0_i32_1 = arith.constant 0 : i32
    return %c0_i32, %c0_i32_0 : i32, i32
  }
  func.func @transform_3(%arg0: i32) -> (i32, i32, i32) {
    %c0_i32 = arith.constant 0 : i32
    %c0_i32_0 = arith.constant 0 : i32
    %c0_i32_1 = arith.constant 0 : i32
    %c0_i32_2 = arith.constant 0 : i32
    return %c0_i32, %c0_i32_0, %c0_i32_1 : i32, i32, i32
  }
  func.func @transform_4(%arg0: i32) -> (i32, i32) {
    %c0_i32 = arith.constant 0 : i32
    %c0_i32_0 = arith.constant 0 : i32
    %c0_i32_1 = arith.constant 0 : i32
    return %c0_i32, %c0_i32_0 : i32, i32
  }
  func.func @transform_5(%arg0: i32) -> (i32, i32) {
    %c0_i32 = arith.constant 0 : i32
    %c0_i32_0 = arith.constant 0 : i32
    %c0_i32_1 = arith.constant 0 : i32
    return %c0_i32, %c0_i32_0 : i32, i32
  }
  func.func @transform_6(%arg0: i32) -> (i32, i32) {
    %c0_i32 = arith.constant 0 : i32
    %c0_i32_0 = arith.constant 0 : i32
    %c0_i32_1 = arith.constant 0 : i32
    return %c0_i32, %c0_i32_0 : i32, i32
  }
  func.func @transform_7(%arg0: i32) -> (i32, i32) {
    %c0_i32 = arith.constant 0 : i32
    %c0_i32_0 = arith.constant 0 : i32
    return %arg0, %c0_i32 : i32, i32
  }
}

</mosaic_0001>

<bundles_post_ra>
// kernel: tpu_custom_call.1
= control target key start
LH: loop header
LB: loop body
LE: loop exit
PB: predicated region body
PF: predicated region fallthrough
CT: control target
= control target key end

     0   :  { %v29_v3 = vlaneseq  ;;  %s1155_s0 = inlined_call_operand.vmem [shape: f32[16,32], index: 0, kind: input, shape index: {}]   ;;  %s1156_s1 = inlined_call_operand.vmem [shape: f32[3,32,16], index: 1, kind: input, shape index: {}]   ;;  %s1157_s2 = inlined_call_operand.vmem [shape: f32[1,16], index: 2, kind: input, shape index: {}]   ;;  %s1158_s3 = inlined_call_operand.vmem [shape: f32[3,16,32], index: 3, kind: input, shape index: {}]   ;;  %s1159_s4 = inlined_call_operand.vmem [shape: f32[1,32], index: 4, kind: input, shape index: {}]   ;;  %s1160_s5 = inlined_call_operand.vmem [shape: f32[32,128], index: 5, kind: input, shape index: {}]   ;;  %s1161_s6 = inlined_call_operand.vmem [shape: f32[1,128], index: 6, kind: input, shape index: {}]   ;;  %s1162_s7 = inlined_call_operand.hbm [shape: f32[16,128], index: 7, kind: output, shape index: {}]  }
   0x1   :  { %v92_v0 = vld [vmem:[%s1156_s1] sm:$0xff]  ;;  %v93_v1 = vld [vmem:[%s1156_s1 + $0x8] sm:$0xff]  ;;  %v94_v2 = vld [vmem:[%s1156_s1 + $0x10] sm:$0xff] }
   0x2   :  { %v894_v4 = vpack.c.bf16 %v93_v1, %v92_v0  ;;  %v95_v5 = vld [vmem:[%s1156_s1 + $0x18] sm:$0xff]  ;;  %v27_v6 = vld [vmem:[%s1155_s0] sm:$0xff]  ;;  %v28_v7 = vld [vmem:[%s1155_s0 + $0x8] sm:$0xff]  ;;  %v1036_v9 = vshrl.u32 %v29_v3, 7 }
   0x3   :  { %v898_v8 = vpack.c.bf16 %v95_v5, %v94_v2  ;;  %v764_v10 = vld [vmem:[%s1156_s1 + $0x20] sm:$0xff]  ;;  %v765_v11 = vld [vmem:[%s1156_s1 + $0x28] sm:$0xff]  ;;  %v85_v12 = vrot.slane %v27_v6, 7  ;;  %v86_v13 = vrot.slane %v28_v7, 7 }
   0x4   :  { %895 = vmatprep.subr.bf16.mxu0 %v894_v4  ;;  %v31_v14 = vadd.s32 8, %v1036_v9  ;;  %v36_v15 = vand.u32 7, %v1036_v9  ;;  %vm87_vm0 = vcmp.lt.s32.totalorder %v1036_v9, 1  ;;  %v902_v16 = vpack.c.bf16 %v765_v11, %v764_v10 }
   0x5   :  { %897 = vmatpush3.bf16.msra.mxu0 %v894_v4 }
   0x6   :  { %899 = vmatprep.subr.bf16.mxu0 %v898_v8 }
   0x7   :  { %12 = vsyncpa [#allocation3], 0  ;;  %v43_v17 = vand.u32 7, %v31_v14  ;;  %v56_v18 = vadd.s32 4294967295, %v36_v15  ;;  %v89_v19 = vsel %vm87_vm0, %v86_v13, %v85_v12  ;;  %v974_v21 = vmov 0.0   ;;  %v766_v25 = vld [vmem:[%s1156_s1 + $0x30] sm:$0xff] }
   0x8   :  { %v68_v23 = vadd.s32 1, %v36_v15  ;;  %vm96_vm2 = vcmask 261120   ;;  %v88_v24 = vsel %vm87_vm0, %v85_v12, %v86_v13  ;;  %v767_v26 = vld [vmem:[%s1156_s1 + $0x38] sm:$0xff]  ;;  %v259_v29 = vrot.slane %v27_v6, 1  ;;  %v772_v33 = vld [vmem:[%s1156_s1 + $0x40] sm:$0xff]  ;;  %v773_v34 = vld [vmem:[%s1156_s1 + $0x48] sm:$0xff] }
   0x9   :  { %901 = vmatpush3.bf16.msra.mxu0 %v898_v8  ;;  %vm58_vm1 = vcmp.ge.s32.totalorder %v56_v18, 0  ;;  %v57_v20 = vadd.s32 4294967295, %v43_v17  ;;  %v260_v30 = vrot.slane %v28_v7, 1  ;;  %v906_v32 = vpack.c.bf16 %v767_v26, %v766_v25  ;;  %v774_v39 = vld [vmem:[%s1156_s1 + $0x50] sm:$0xff]  ;;  %v775_v40 = vld [vmem:[%s1156_s1 + $0x58] sm:$0xff]  ;;  %v378_v46 = vld [vmem:[%s1158_s3] sm:$0xff] }
   0xa   :  { %v1049_v22 = vsel %vm58_vm1, 1.0, %v974_v21  ;;  %903 = vmatprep.subr.bf16.mxu0 %v902_v16  ;;  %vm72_vm4 = vcmp.lt.s32.totalorder %v68_v23, 8  ;;  %vm261_vm5 = vcmp.lt.s32.totalorder %v1036_v9, 7  ;;  %v69_v35 = vadd.s32 1, %v43_v17  ;;  %v379_v47 = vld [vmem:[%s1158_s3 + $0x8] sm:$0xff]  ;;  %v779_v49 = vld [vmem:[%s1158_s3 + $0x10] sm:$0xff] }
   0xb   :  { %v90_v27 = vmul.f32 %v1049_v22, %v89_v19  ;;  %vm59_vm3 = vcmp.ge.s32.totalorder %v57_v20, 0  ;;  %v910_v36 = vpack.c.bf16 %v773_v34, %v772_v33  ;;  %v762_v37 = vsel %vm72_vm4, 1.0, %v974_v21  ;;  %v780_v50 = vld [vmem:[%s1158_s3 + $0x18] sm:$0xff]  ;;  %v778_v52 = vld [vmem:[%s1157_s2] ss:$0 sm:$0xff]  ;;  %v786_v2 = vld [vmem:[%s1158_s3 + $0x28] sm:$0xff] }
   0xc   :  { %v1060_v28 = vsel %vm59_vm3, 1.0, %v974_v21  ;;  %v262_v38 = vsel %vm261_vm5, %v259_v29, %v260_v30  ;;  %vm73_vm6 = vcmp.lt.s32.totalorder %v69_v35, 8  ;;  %v914_v42 = vpack.c.bf16 %v775_v40, %v774_v39  ;;  %v785_v1 = vld [vmem:[%s1158_s3 + $0x20] sm:$0xff]  ;;  %v651_v13 = vld [vmem:[%s1160_s5 + $0x8] sm:$0xff]  ;;  %v652_v15 = vld [vmem:[%s1160_s5 + $0x10] sm:$0xff]  ;;  %s975_s26 = smov [#allocation2]  }
   0xd   :  { %837 = vmatprep.mubr.msk.f32.mxu0 %vm96_vm2, %v90_v27  ;;  %v91_v31 = vmul.f32 %v1060_v28, %v88_v24  ;;  %v264_v41 = vmul.f32 %v762_v37, %v262_v38  ;;  %v763_v43 = vsel %vm73_vm6, 1.0, %v974_v21  ;;  %v263_v44 = vsel %vm261_vm5, %v260_v30, %v259_v29  ;;  %v650_v12 = vld [vmem:[%s1160_s5] sm:$0xff] }
   0xe   :  { %v265_v45 = vmul.f32 %v763_v43, %v263_v44  ;;  %v918_v48 = vpack.c.bf16 %v379_v47, %v378_v46  ;;  %v922_v51 = vpack.c.bf16 %v780_v50, %v779_v49  ;;  %vm380_vm9 = vcmask 130048   ;;  %v789_v18 = vld [vmem:[%s1159_s4] ss:$0 sm:$0xff]  ;;  %s749_s4 = sshll.u32 %s975_s26, 4  ;;  %s750_s4 = int_to_ptr.vmem [resolvable:$true] %s749_s4 }
   0xf   :  { %838 = vmatmul.mubr.msk.f32.vlgmr.msra.gmra.mrb[0].mxu0 %vm96_vm2, %v91_v31  ;;  %v926_v10 = vpack.c.bf16 %v786_v2, %v785_v1  ;;  %v930_v14 = vpack.c.bf16 %v651_v13, %v650_v12  ;;  %v790_v27 = vld [vmem:[%s1161_s6] ss:$0 sm:$0xff]  ;;  %s950_s27 = scalar_lea.vmem %s750_s4, 256  ;;  %p955_p1 = scmp.lt.s32.totalorder %s750_s4, %s750_s4 }
  0x10   :  { %905 = vmatpush3.bf16.msra.mxu0 %v902_v16  ;;  %848 = vmatprep.mubr.msk.f32.mxu0 %vm96_vm2, %v27_v6  ;;  %v653_v16 = vld [vmem:[%s1160_s5 + $0x18] sm:$0xff]  ;;  %p951_p0 = scmp.ne.s32.totalorder %s750_s4, %s950_s27  ;;  %p956_p2 = scmp.lt.s32.totalorder %s950_s27, %s950_s27 }
  0x11   :  { %907 = vmatprep.subr.bf16.mxu0 %v906_v32  ;;  %919 = vmatprep.subr.bf16.mxu1 %v918_v48  ;;  %v934_v17 = vpack.c.bf16 %v653_v16, %v652_v15 }
  0x12   :  { %921 = vmatpush3.bf16.msra.mxu1 %v918_v48  ;;  %p957_p3 = por %p956_p2, %p955_p1 }
  0x13   :  { %923 = vmatprep.subr.bf16.mxu1 %v922_v51 }
  0x14   :  { %909 = vmatpush3.bf16.msra.mxu0 %v906_v32  ;;  %p958_p4 = pnand %p957_p3, %p951_p0 }
  0x15   :  { %911 = vmatprep.subr.bf16.mxu0 %v910_v36 }
  0x17   :  { %849 = vmatmul.mubr.msk.f32.vlgmr.msra.gmra.mrb[0].mxu0 %vm96_vm2, %v28_v7 }
  0x18   :  { %913 = vmatpush3.bf16.msra.mxu0 %v910_v36  ;;  %859 = vmatprep.mubr.msk.f32.mxu0 %vm96_vm2, %v264_v41 }
  0x19   :  { %915 = vmatprep.subr.bf16.mxu0 %v914_v42 }
  0x1c   :  { %917 = vmatpush3.bf16.msra.mxu0 %v914_v42 }
  0x1f   :  { %860 = vmatmul.mubr.msk.f32.vlgmr.msra.gmra.mrb[0].mxu0 %vm96_vm2, %v265_v45 }
  0xf2   :  { %v861_v53 = vpop.f32.mrb[0].mxu0 }
  0xf3   :  { %v362_v54 = vadd.f32 %v861_v53, %v778_v52  ;;  %v343_v55 = vpop.f32.mrb[1].mxu0 }
  0xf4   :  { %v361_v56 = vadd.f32 %v778_v52, %v343_v55 }
  0xf5   :  { %vm364_vm7 = vcmp.ge.f32.partialorder %v362_v54, 0.0  ;;  %v366_v57 = vmul.f32 0.22916667, %v362_v54 }
  0xf6   :  { %vm363_vm8 = vcmp.ge.f32.partialorder %v361_v56, 0.0  ;;  %v365_v58 = vmul.f32 0.22916667, %v361_v56 }
  0xf7   :  { %v368_v59 = vsel %vm364_vm7, %v362_v54, %v366_v57 }
  0xf8   :  { %v544_v60 = vrot.slane %v368_v59, 1  ;;  %v367_v61 = vsel %vm363_vm8, %v361_v56, %v365_v58  ;;  %v373_v62 = vrot.slane %v368_v59, 7 }
  0xf9   :  { %v543_v63 = vrot.slane %v367_v61, 1  ;;  %v372_v0 = vrot.slane %v367_v61, 7 }
  0xfb   :  { %v546_v3 = vsel %vm261_vm5, %v544_v60, %v543_v63  ;;  %v375_v4 = vsel %vm87_vm0, %v373_v62, %v372_v0  ;;  %v374_v5 = vsel %vm87_vm0, %v372_v0, %v373_v62  ;;  %v545_v6 = vsel %vm261_vm5, %v543_v63, %v544_v60 }
  0xfc   :  { %v376_v7 = vmul.f32 %v1049_v22, %v375_v4  ;;  %v377_v8 = vmul.f32 %v1060_v28, %v374_v5  ;;  %v547_v11 = vmul.f32 %v762_v37, %v545_v6  ;;  %v548_v9 = vmul.f32 %v763_v43, %v546_v3 }
  0xfe   :  { %866 = vmatprep.mubr.msk.f32.mxu1 %vm380_vm9, %v376_v7 }
  0xff   :  { %867 = vmatmul.mubr.msk.f32.vlgmr.msra.gmra.mrb[0].mxu1 %vm380_vm9, %v377_v8 }
 0x100   :  { %925 = vmatpush3.bf16.msra.mxu1 %v922_v51  ;;  %873 = vmatprep.mubr.msk.f32.mxu1 %vm380_vm9, %v367_v61 }
 0x101   :  { %927 = vmatprep.subr.bf16.mxu1 %v926_v10 }
 0x107   :  { %874 = vmatmul.mubr.msk.f32.vlgmr.msra.gmra.mrb[0].mxu1 %vm380_vm9, %v368_v59 }
 0x108   :  { %929 = vmatpush3.bf16.msra.mxu1 %v926_v10  ;;  %880 = vmatprep.mubr.msk.f32.mxu1 %vm380_vm9, %v547_v11 }
 0x109   :  { %931 = vmatprep.subr.bf16.mxu1 %v930_v14 }
 0x10f   :  { %881 = vmatmul.mubr.msk.f32.vlgmr.msra.gmra.mrb[0].mxu1 %vm380_vm9, %v548_v9 }
 0x110   :  { %933 = vmatpush3.bf16.msra.mxu1 %v930_v14 }
 0x111   :  { %935 = vmatprep.subr.bf16.mxu1 %v934_v17 }
 0x114   :  { %937 = vmatpush3.bf16.msra.mxu1 %v934_v17 }
 0x1e2   :  { %v882_v19 = vpop.f32.mrb[0].mxu1 }
 0x1e3   :  { %v643_v20 = vadd.f32 %v882_v19, %v789_v18  ;;  %v624_v21 = vpop.f32.mrb[1].mxu1 }
 0x1e4   :  { %v642_v22 = vadd.f32 %v789_v18, %v624_v21 }
 0x1e5   :  { %v647_v23 = vmul.f32 0.22916667, %v643_v20  ;;  %vm645_vm10 = vcmp.ge.f32.partialorder %v643_v20, 0.0 }
 0x1e6   :  { %vm644_vm11 = vcmp.ge.f32.partialorder %v642_v22, 0.0  ;;  %v646_v24 = vmul.f32 0.22916667, %v642_v22 }
 0x1e7   :  { %v649_v26 = vsel %vm645_vm10, %v643_v20, %v647_v23 }
 0x1e8   :  { %v648_v25 = vsel %vm644_vm11, %v642_v22, %v646_v24 }
 0x1e9   :  { %891 = vmatprep.mubr.msk.f32.mxu1 %vm96_vm2, %v648_v25 }
 0x1ea   :  { %892 = vmatmul.mubr.msk.f32.vlgmr.msra.gmra.mrb[2].mxu1 %vm96_vm2, %v649_v26 }
 0x2bd   :  { %v893_v28 = vpop.f32.mrb[2].mxu1 }
 0x2be   :  { %v739_v29 = vadd.f32 %v893_v28, %v790_v27  ;;  %v733_v30 = vpop.f32.mrb[3].mxu1 }
 0x2bf   :  { %v734_v31 = vadd.f32 %v790_v27, %v733_v30 }
 0x2c0   :  { %743 = vst [vmem:[#allocation2 + $0x8] sm:$0xff] %v739_v29 }
 0x2c1   :  { %742 = vst [vmem:[#allocation2] sm:$0xff] %v734_v31 }
 0x2c2   :  { %961 = shalt.err (!%p958_p4)
}
 0x2c3   :  { %s962_s6 = scalar_lea.hbm %s1162_s7, 256 }
 0x2c4   :  { %p963_p5 = scmp.ne.s32.totalorder %s1162_s7, %s962_s6  ;;  %p966_p6 = scmp.lt.u32.totalorder %s962_s6, %s1162_s7 }
 0x2c6   :  { %p968_p7 = pnand %p966_p6, %p963_p5 }
 0x2c8   :  { %971 = shalt.err (!%p968_p7)
}
 0x2c9   :  { %s976_s10 = smov 128   ;;  %s977_s11 = smov 8  }
 0x2ca   :  { %755 = dma.vmem_to_hbm [thread:$0]  %s750_s4, 256, %s1162_s7, [#allocation3], %s976_s10, %s976_s10, %s977_s11  }
 0x2cb   :  { %972 = dma.done.wait [#allocation3], 256  }
 0x2cc   :  { %973 = vsyncadd [#allocation3], 4294967040 }
 0x2cd   :  { %759 = vsyncpa [#allocation3], 1 }

</bundles_post_ra>
